<compile_context>
chip_gen: v5e
topology: v5e:2x2
jax: 0.10.0
libtpu: 0.0.40
codegen_flags: <defaults>
</compile_context>

<pallas_src>
import jax
import jax.numpy as jnp
from jax.experimental import pallas as pl
from jax.experimental.pallas import tpu as pltpu

_NEG_BIG = -1e30  # "minus infinity" bias for padded logit columns (finite -> no NaN risk)


def _round_up(n: int, m: int) -> int:
    return ((n + m - 1) // m) * m


def _pad2d(a, rows: int, cols: int, fill=0.0):
    r, c = a.shape
    return jnp.pad(a, ((0, rows - r), (0, cols - c)), constant_values=fill)


def _leaky_relu(x, slope=0.2):
    return jnp.where(x > 0, x, slope * x)


def _mlp_kernel(x_ref,
                w1_ref, b1_ref,
                w2_ref, b2_ref,
                w3_ref, b3_ref,
                w4_ref, b4_ref,
                w5_ref, b5_ref,
                out_ref):
    """One batch-tile of the 5-layer MLP + softmax (hidden dims lane-padded to 128)."""

    def layer(h, w_ref, b_ref, act):
        # Cast activations to the weight dtype (no-op for f32, bf16 datapath for
        # bf16 weights); always accumulate in f32 on the MXU.
        y = jnp.dot(h.astype(w_ref.dtype), w_ref[...],
                    preferred_element_type=jnp.float32) + b_ref[...]
        return _leaky_relu(y) if act else y

    h = x_ref[...]
    h = layer(h, w1_ref, b1_ref, act=True)
    h = layer(h, w2_ref, b2_ref, act=True)
    h = layer(h, w3_ref, b3_ref, act=True)
    h = layer(h, w4_ref, b4_ref, act=True)
    logits = layer(h, w5_ref, b5_ref, act=False)   # padded cols carry -1e30 bias

    # Numerically stable softmax over the (padded) feature axis; padded columns
    # contribute exp(-1e30 - m) == 0, so normalization only sees real logits.
    m = jnp.max(logits, axis=1, keepdims=True)
    e = jnp.exp(logits - m)
    denom = jnp.sum(e, axis=1, keepdims=True)
    inv = pl.reciprocal(denom)                      # reciprocal + vmul, no vdiv
    out_ref[...] = (e * inv).astype(out_ref.dtype)


def fc_forward(x, params, *, weight_dtype=jnp.float32, block_rows=512):
    """params: dict with w1..w5 of shape (in, out) and b1..b5 of shape (1, out).

    weight_dtype=jnp.bfloat16 is recommended on v6e/v7x (f32 accumulation kept);
    leave f32 on v5e. block_rows is the batch tile (rounded to 8 sublanes).
    """
    batch, in_dim = x.shape
    ylen = params["w5"].shape[1]
    assert params["w1"].shape[0] == in_dim

    # Real and lane-padded (multiple of 128) layer output widths.
    dims = [in_dim] + [params[f"w{i}"].shape[1] for i in range(1, 6)]
    pdims = [in_dim] + [_round_up(d, 128) for d in dims[1:]]

    # Batch tiling: tile is a multiple of 8 sublanes; batch padded to a tile multiple.
    tb = min(_round_up(block_rows, 8), _round_up(batch, 8))
    batch_padded = tb * pl.cdiv(batch, tb)
    grid = (batch_padded // tb,)

    # Input keeps its real feature width (block last dim == full array dim is
    # legal), so activation HBM traffic is not lane-inflated.  Stream x in the
    # compute dtype to halve read bytes on the bf16 path.
    x_dtype = weight_dtype if weight_dtype == jnp.bfloat16 else jnp.float32
    x_pad = _pad2d(x.astype(x_dtype), batch_padded, in_dim)
    args = [x_pad]
    in_specs = [pl.BlockSpec((tb, in_dim), lambda i: (i, 0))]

    for li in range(1, 6):
        rows = in_dim if li == 1 else pdims[li - 1]
        w = _pad2d(params[f"w{li}"], rows, pdims[li]).astype(weight_dtype)
        bias_fill = _NEG_BIG if li == 5 else 0.0     # kill padded logit columns
        b = _pad2d(params[f"b{li}"], 1, pdims[li], fill=bias_fill).astype(jnp.float32)
        args += [w, b]
        in_specs += [
            pl.BlockSpec((rows, pdims[li]), lambda i: (0, 0)),  # VMEM-resident
            pl.BlockSpec((1, pdims[li]), lambda i: (0, 0)),     # VMEM-resident
        ]
    out_specs = pl.BlockSpec((tb, pdims[5]), lambda i: (i, 0))  # lane-dense store

    # Advisory cost estimate for the XLA scheduler.
    w_bytes = jnp.dtype(weight_dtype).itemsize
    x_bytes = jnp.dtype(x_dtype).itemsize
    flops = 2 * batch_padded * sum(pdims[i] * pdims[i + 1] for i in range(5))
    transcendentals = batch_padded * pdims[5]        # exp in the softmax
    bytes_accessed = (
        batch_padded * in_dim * x_bytes                              # x
        + sum(pdims[i] * pdims[i + 1] * w_bytes for i in range(5))   # weights
        + sum(pdims[i + 1] * 4 for i in range(5))                    # biases
        + batch_padded * pdims[5] * 4                                # out
    )

    out = pl.pallas_call(
        _mlp_kernel,
        out_shape=jax.ShapeDtypeStruct((batch_padded, pdims[5]), jnp.float32),
        grid=grid,
        in_specs=in_specs,
        out_specs=out_specs,
        compiler_params=pltpu.CompilerParams(
            dimension_semantics=("parallel",),        # megacore sharding on v7x
            vmem_limit_bytes=32 * 1024 * 1024,        # ample at tb<=2048, tiny weights
        ),
        cost_estimate=pl.CostEstimate(
            flops=flops,
            transcendentals=transcendentals,
            bytes_accessed=bytes_accessed,
        ),
    )(*args)

    # Drop batch / lane padding, then mimic PyTorch's .squeeze().
    return jnp.squeeze(out[:batch, :ylen])


def init_params(key, lizi, hid1, hid2, hid3, hid4, ylen):
    """Deterministic PyTorch-Linear-style init: U(-1/sqrt(fan_in), 1/sqrt(fan_in))."""
    dims = [2 ** (2 * lizi), hid1, hid2, hid3, hid4, ylen]
    params = {}
    for i in range(5):
        fan_in, fan_out = dims[i], dims[i + 1]
        key, kw, kb = jax.random.split(key, 3)
        bound = 1.0 / jnp.sqrt(fan_in)
        params[f"w{i+1}"] = jax.random.uniform(
            kw, (fan_in, fan_out), jnp.float32, -bound, bound)
        params[f"b{i+1}"] = jax.random.uniform(
            kb, (1, fan_out), jnp.float32, -bound, bound)
    return params


def fc_reference(x, params):
    """Plain-JAX reference for sanity checking."""
    h = x
    for i in range(1, 5):
        h = _leaky_relu(h @ params[f"w{i}"] + params[f"b{i}"])
    logits = h @ params["w5"] + params["b5"]
    return jnp.squeeze(jax.nn.softmax(logits, axis=1))


if __name__ == "__main__":
    lizi, hid1, hid2, hid3, hid4, ylen = 2, 32, 32, 32, 32, 8
    in_dim = 2 ** (2 * lizi)

    key = jax.random.PRNGKey(0)
    key, kx, kx2 = jax.random.split(key, 3)
    params = init_params(key, lizi, hid1, hid2, hid3, hid4, ylen)

    # --- small-batch test (f32, tight tolerance) -----------------------------
    batch = 2
    x = jax.random.normal(kx, (batch, in_dim), jnp.float32)
    ref = jax.block_until_ready(fc_reference(x, params))
    out = jax.block_until_ready(fc_forward(x, params))
    assert out.shape == (batch, ylen), out.shape
    assert jnp.allclose(out, ref, atol=1e-5, rtol=1e-5), "f32 mismatch vs reference"
    assert jnp.allclose(jnp.sum(out, axis=-1), 1.0, atol=1e-5), "softmax rows != 1"

    # --- multi-tile test: non-multiple batch exercises batch padding + grid --
    batch2 = 1000
    x2 = jax.random.normal(kx2, (batch2, in_dim), jnp.float32)
    ref2 = jax.block_until_ready(fc_reference(x2, params))
    out2 = jax.block_until_ready(fc_forward(x2, params, block_rows=256))
    assert out2.shape == (batch2, ylen), out2.shape
    assert jnp.allclose(out2, ref2, atol=1e-5, rtol=1e-5), "tiled mismatch vs reference"

    # --- bf16 weights + bf16 x streaming (v6e/v7x), f32 MXU accumulation -----
    out_bf16 = jax.block_until_ready(
        fc_forward(x, params, weight_dtype=jnp.bfloat16))
    assert out_bf16.shape == (batch, ylen), out_bf16.shape
    assert jnp.allclose(out_bf16, ref, atol=5e-2, rtol=5e-2), "bf16 mismatch"
    assert jnp.allclose(jnp.sum(out_bf16, axis=-1), 1.0, atol=1e-3), "bf16 rows != 1"

    print("KERNEL_OK")
</pallas_src>

<mosaic_0001>
module attributes {stable_mosaic.version = 11 : i64} {
  func.func @_mlp_kernel(%arg0: i32, %arg1: memref<8x16xf32, #tpu.memory_space<vmem>>, %arg2: memref<16x128xf32, #tpu.memory_space<vmem>>, %arg3: memref<1x128xf32, #tpu.memory_space<vmem>>, %arg4: memref<128x128xf32, #tpu.memory_space<vmem>>, %arg5: memref<1x128xf32, #tpu.memory_space<vmem>>, %arg6: memref<128x128xf32, #tpu.memory_space<vmem>>, %arg7: memref<1x128xf32, #tpu.memory_space<vmem>>, %arg8: memref<128x128xf32, #tpu.memory_space<vmem>>, %arg9: memref<1x128xf32, #tpu.memory_space<vmem>>, %arg10: memref<128x128xf32, #tpu.memory_space<vmem>>, %arg11: memref<1x128xf32, #tpu.memory_space<vmem>>, %arg12: memref<8x128xf32, #tpu.memory_space<vmem>>) attributes {dimension_semantics = [#tpu.dimension_semantics<parallel>], iteration_bounds = array<i64: 1>, scalar_prefetch = 0 : i64, scratch_operands = 0 : i64, tpu.core_type = #tpu.core_type<tc>, window_params = [{transform_indices = @transform_0, window_bounds = array<i64: 8, 16>}, {pipeline_mode = #tpu.pipeline_mode<synchronous>, transform_indices = @transform_1, window_bounds = array<i64: 16, 128>}, {pipeline_mode = #tpu.pipeline_mode<synchronous>, transform_indices = @transform_2, window_bounds = array<i64: 1, 128>}, {pipeline_mode = #tpu.pipeline_mode<synchronous>, transform_indices = @transform_3, window_bounds = array<i64: 128, 128>}, {pipeline_mode = #tpu.pipeline_mode<synchronous>, transform_indices = @transform_4, window_bounds = array<i64: 1, 128>}, {pipeline_mode = #tpu.pipeline_mode<synchronous>, transform_indices = @transform_5, window_bounds = array<i64: 128, 128>}, {pipeline_mode = #tpu.pipeline_mode<synchronous>, transform_indices = @transform_6, window_bounds = array<i64: 1, 128>}, {pipeline_mode = #tpu.pipeline_mode<synchronous>, transform_indices = @transform_7, window_bounds = array<i64: 128, 128>}, {pipeline_mode = #tpu.pipeline_mode<synchronous>, transform_indices = @transform_8, window_bounds = array<i64: 1, 128>}, {pipeline_mode = #tpu.pipeline_mode<synchronous>, transform_indices = @transform_9, window_bounds = array<i64: 128, 128>}, {pipeline_mode = #tpu.pipeline_mode<synchronous>, transform_indices = @transform_10, window_bounds = array<i64: 1, 128>}, {transform_indices = @transform_11, window_bounds = array<i64: 8, 128>}]} {
    %c0 = arith.constant 0 : index
    %c0_0 = arith.constant 0 : index
    %0 = vector.load %arg1[%c0, %c0_0] : memref<8x16xf32, #tpu.memory_space<vmem>>, vector<8x16xf32>
    %c0_1 = arith.constant 0 : index
    %c0_2 = arith.constant 0 : index
    %1 = vector.load %arg2[%c0_1, %c0_2] : memref<16x128xf32, #tpu.memory_space<vmem>>, vector<16x128xf32>
    %cst = arith.constant dense<0.000000e+00> : vector<8x128xf32>
    %2 = tpu.matmul %0, %1, %cst {dimension_numbers = #tpu.dot_dimension_numbers<[1], [0], [0], [1], [0, 0, 1, 1], [], []>} : vector<8x16xf32>, vector<16x128xf32>, vector<8x128xf32> -> vector<8x128xf32>
    %c0_3 = arith.constant 0 : index
    %c0_4 = arith.constant 0 : index
    %3 = vector.load %arg3[%c0_3, %c0_4] : memref<1x128xf32, #tpu.memory_space<vmem>>, vector<1x128xf32>
    %4 = vector.broadcast %3 : vector<1x128xf32> to vector<8x128xf32>
    %5 = arith.addf %2, %4 : vector<8x128xf32>
    %cst_5 = arith.constant 0.000000e+00 : f32
    %6 = vector.broadcast %cst_5 : f32 to vector<8x128xf32>
    %7 = arith.cmpf ogt, %5, %6 : vector<8x128xf32>
    %cst_6 = arith.constant 2.000000e-01 : f32
    %8 = vector.broadcast %cst_6 : f32 to vector<8x128xf32>
    %9 = arith.mulf %8, %5 : vector<8x128xf32>
    %10 = arith.select %7, %5, %9 : vector<8x128xi1>, vector<8x128xf32>
    %c0_7 = arith.constant 0 : index
    %c0_8 = arith.constant 0 : index
    %11 = vector.load %arg4[%c0_7, %c0_8] : memref<128x128xf32, #tpu.memory_space<vmem>>, vector<128x128xf32>
    %cst_9 = arith.constant dense<0.000000e+00> : vector<8x128xf32>
    %12 = tpu.matmul %10, %11, %cst_9 {dimension_numbers = #tpu.dot_dimension_numbers<[1], [0], [0], [1], [0, 0, 1, 1], [], []>} : vector<8x128xf32>, vector<128x128xf32>, vector<8x128xf32> -> vector<8x128xf32>
    %c0_10 = arith.constant 0 : index
    %c0_11 = arith.constant 0 : index
    %13 = vector.load %arg5[%c0_10, %c0_11] : memref<1x128xf32, #tpu.memory_space<vmem>>, vector<1x128xf32>
    %14 = vector.broadcast %13 : vector<1x128xf32> to vector<8x128xf32>
    %15 = arith.addf %12, %14 : vector<8x128xf32>
    %cst_12 = arith.constant 0.000000e+00 : f32
    %16 = vector.broadcast %cst_12 : f32 to vector<8x128xf32>
    %17 = arith.cmpf ogt, %15, %16 : vector<8x128xf32>
    %cst_13 = arith.constant 2.000000e-01 : f32
    %18 = vector.broadcast %cst_13 : f32 to vector<8x128xf32>
    %19 = arith.mulf %18, %15 : vector<8x128xf32>
    %20 = arith.select %17, %15, %19 : vector<8x128xi1>, vector<8x128xf32>
    %c0_14 = arith.constant 0 : index
    %c0_15 = arith.constant 0 : index
    %21 = vector.load %arg6[%c0_14, %c0_15] : memref<128x128xf32, #tpu.memory_space<vmem>>, vector<128x128xf32>
    %cst_16 = arith.constant dense<0.000000e+00> : vector<8x128xf32>
    %22 = tpu.matmul %20, %21, %cst_16 {dimension_numbers = #tpu.dot_dimension_numbers<[1], [0], [0], [1], [0, 0, 1, 1], [], []>} : vector<8x128xf32>, vector<128x128xf32>, vector<8x128xf32> -> vector<8x128xf32>
    %c0_17 = arith.constant 0 : index
    %c0_18 = arith.constant 0 : index
    %23 = vector.load %arg7[%c0_17, %c0_18] : memref<1x128xf32, #tpu.memory_space<vmem>>, vector<1x128xf32>
    %24 = vector.broadcast %23 : vector<1x128xf32> to vector<8x128xf32>
    %25 = arith.addf %22, %24 : vector<8x128xf32>
    %cst_19 = arith.constant 0.000000e+00 : f32
    %26 = vector.broadcast %cst_19 : f32 to vector<8x128xf32>
    %27 = arith.cmpf ogt, %25, %26 : vector<8x128xf32>
    %cst_20 = arith.constant 2.000000e-01 : f32
    %28 = vector.broadcast %cst_20 : f32 to vector<8x128xf32>
    %29 = arith.mulf %28, %25 : vector<8x128xf32>
    %30 = arith.select %27, %25, %29 : vector<8x128xi1>, vector<8x128xf32>
    %c0_21 = arith.constant 0 : index
    %c0_22 = arith.constant 0 : index
    %31 = vector.load %arg8[%c0_21, %c0_22] : memref<128x128xf32, #tpu.memory_space<vmem>>, vector<128x128xf32>
    %cst_23 = arith.constant dense<0.000000e+00> : vector<8x128xf32>
    %32 = tpu.matmul %30, %31, %cst_23 {dimension_numbers = #tpu.dot_dimension_numbers<[1], [0], [0], [1], [0, 0, 1, 1], [], []>} : vector<8x128xf32>, vector<128x128xf32>, vector<8x128xf32> -> vector<8x128xf32>
    %c0_24 = arith.constant 0 : index
    %c0_25 = arith.constant 0 : index
    %33 = vector.load %arg9[%c0_24, %c0_25] : memref<1x128xf32, #tpu.memory_space<vmem>>, vector<1x128xf32>
    %34 = vector.broadcast %33 : vector<1x128xf32> to vector<8x128xf32>
    %35 = arith.addf %32, %34 : vector<8x128xf32>
    %cst_26 = arith.constant 0.000000e+00 : f32
    %36 = vector.broadcast %cst_26 : f32 to vector<8x128xf32>
    %37 = arith.cmpf ogt, %35, %36 : vector<8x128xf32>
    %cst_27 = arith.constant 2.000000e-01 : f32
    %38 = vector.broadcast %cst_27 : f32 to vector<8x128xf32>
    %39 = arith.mulf %38, %35 : vector<8x128xf32>
    %40 = arith.select %37, %35, %39 : vector<8x128xi1>, vector<8x128xf32>
    %c0_28 = arith.constant 0 : index
    %c0_29 = arith.constant 0 : index
    %41 = vector.load %arg10[%c0_28, %c0_29] : memref<128x128xf32, #tpu.memory_space<vmem>>, vector<128x128xf32>
    %cst_30 = arith.constant dense<0.000000e+00> : vector<8x128xf32>
    %42 = tpu.matmul %40, %41, %cst_30 {dimension_numbers = #tpu.dot_dimension_numbers<[1], [0], [0], [1], [0, 0, 1, 1], [], []>} : vector<8x128xf32>, vector<128x128xf32>, vector<8x128xf32> -> vector<8x128xf32>
    %c0_31 = arith.constant 0 : index
    %c0_32 = arith.constant 0 : index
    %43 = vector.load %arg11[%c0_31, %c0_32] : memref<1x128xf32, #tpu.memory_space<vmem>>, vector<1x128xf32>
    %44 = vector.broadcast %43 : vector<1x128xf32> to vector<8x128xf32>
    %45 = arith.addf %42, %44 : vector<8x128xf32>
    %cst_33 = arith.constant dense<0xFF800000> : vector<8xf32>
    %46 = vector.multi_reduction <maximumf>, %45, %cst_33 [1] : vector<8x128xf32> to vector<8xf32>
    %47 = vector.shape_cast %46 : vector<8xf32> to vector<8x1xf32>
    %48 = vector.broadcast %47 : vector<8x1xf32> to vector<8x128xf32>
    %49 = arith.subf %45, %48 : vector<8x128xf32>
    %50 = math.exp %49 : vector<8x128xf32>
    %cst_34 = arith.constant dense<0.000000e+00> : vector<8xf32>
    %51 = vector.multi_reduction <add>, %50, %cst_34 [1] : vector<8x128xf32> to vector<8xf32>
    %52 = vector.shape_cast %51 : vector<8xf32> to vector<8x1xf32>
    %53 = tpu.reciprocal %52 : vector<8x1xf32> -> vector<8x1xf32>
    %54 = vector.broadcast %53 : vector<8x1xf32> to vector<8x128xf32>
    %55 = arith.mulf %50, %54 : vector<8x128xf32>
    %c0_35 = arith.constant 0 : index
    %c0_36 = arith.constant 0 : index
    %56 = vector.load %arg12[%c0_35, %c0_36] : memref<8x128xf32, #tpu.memory_space<vmem>>, vector<8x128xf32>
    tpu.vector_store %arg12[%c0_35, %c0_36], %55 {strides = array<i32>} : memref<8x128xf32, #tpu.memory_space<vmem>>, vector<8x128xf32>,
    return
  }
  func.func @transform_0(%arg0: i32) -> (i32, i32) {
    %c0_i32 = arith.constant 0 : i32
    %c0_i32_0 = arith.constant 0 : i32
    return %arg0, %c0_i32 : i32, i32
  }
  func.func @transform_1(%arg0: i32) -> (i32, i32) {
    %c0_i32 = arith.constant 0 : i32
    %c0_i32_0 = arith.constant 0 : i32
    %c0_i32_1 = arith.constant 0 : i32
    return %c0_i32, %c0_i32_0 : i32, i32
  }
  func.func @transform_2(%arg0: i32) -> (i32, i32) {
    %c0_i32 = arith.constant 0 : i32
    %c0_i32_0 = arith.constant 0 : i32
    %c0_i32_1 = arith.constant 0 : i32
    return %c0_i32, %c0_i32_0 : i32, i32
  }
  func.func @transform_3(%arg0: i32) -> (i32, i32) {
    %c0_i32 = arith.constant 0 : i32
    %c0_i32_0 = arith.constant 0 : i32
    %c0_i32_1 = arith.constant 0 : i32
    return %c0_i32, %c0_i32_0 : i32, i32
  }
  func.func @transform_4(%arg0: i32) -> (i32, i32) {
    %c0_i32 = arith.constant 0 : i32
    %c0_i32_0 = arith.constant 0 : i32
    %c0_i32_1 = arith.constant 0 : i32
    return %c0_i32, %c0_i32_0 : i32, i32
  }
  func.func @transform_5(%arg0: i32) -> (i32, i32) {
    %c0_i32 = arith.constant 0 : i32
    %c0_i32_0 = arith.constant 0 : i32
    %c0_i32_1 = arith.constant 0 : i32
    return %c0_i32, %c0_i32_0 : i32, i32
  }
  func.func @transform_6(%arg0: i32) -> (i32, i32) {
    %c0_i32 = arith.constant 0 : i32
    %c0_i32_0 = arith.constant 0 : i32
    %c0_i32_1 = arith.constant 0 : i32
    return %c0_i32, %c0_i32_0 : i32, i32
  }
  func.func @transform_7(%arg0: i32) -> (i32, i32) {
    %c0_i32 = arith.constant 0 : i32
    %c0_i32_0 = arith.constant 0 : i32
    %c0_i32_1 = arith.constant 0 : i32
    return %c0_i32, %c0_i32_0 : i32, i32
  }
  func.func @transform_8(%arg0: i32) -> (i32, i32) {
    %c0_i32 = arith.constant 0 : i32
    %c0_i32_0 = arith.constant 0 : i32
    %c0_i32_1 = arith.constant 0 : i32
    return %c0_i32, %c0_i32_0 : i32, i32
  }
  func.func @transform_9(%arg0: i32) -> (i32, i32) {
    %c0_i32 = arith.constant 0 : i32
    %c0_i32_0 = arith.constant 0 : i32
    %c0_i32_1 = arith.constant 0 : i32
    return %c0_i32, %c0_i32_0 : i32, i32
  }
  func.func @transform_10(%arg0: i32) -> (i32, i32) {
    %c0_i32 = arith.constant 0 : i32
    %c0_i32_0 = arith.constant 0 : i32
    %c0_i32_1 = arith.constant 0 : i32
    return %c0_i32, %c0_i32_0 : i32, i32
  }
  func.func @transform_11(%arg0: i32) -> (i32, i32) {
    %c0_i32 = arith.constant 0 : i32
    %c0_i32_0 = arith.constant 0 : i32
    return %arg0, %c0_i32 : i32, i32
  }
}

</mosaic_0001>

<bundles_post_ra>
// kernel: tpu_custom_call.1
= control target key start
LH: loop header
LB: loop body
LE: loop exit
PB: predicated region body
PF: predicated region fallthrough
CT: control target
= control target key end

     0   :  { %16 = vsyncpa [#allocation3], 0  ;;  %s694_s0 = inlined_call_operand.hbm [shape: f32[8,16], index: 0, kind: input, shape index: {}]   ;;  %s695_s1 = inlined_call_operand.hbm [shape: f32[16,128], index: 1, kind: input, shape index: {}]   ;;  %s696_s2 = inlined_call_operand.vmem [shape: f32[1,128], index: 2, kind: input, shape index: {}]   ;;  %s697_s3 = inlined_call_operand.hbm [shape: f32[128,128], index: 3, kind: input, shape index: {}]   ;;  %s698_s4 = inlined_call_operand.vmem [shape: f32[1,128], index: 4, kind: input, shape index: {}]   ;;  %s699_s5 = inlined_call_operand.hbm [shape: f32[128,128], index: 5, kind: input, shape index: {}]   ;;  %s700_s6 = inlined_call_operand.vmem [shape: f32[1,128], index: 6, kind: input, shape index: {}]   ;;  %s701_s7 = inlined_call_operand.hbm [shape: f32[128,128], index: 7, kind: input, shape index: {}]   ;;  %s702_s8 = inlined_call_operand.vmem [shape: f32[1,128], index: 8, kind: input, shape index: {}]   ;;  %s703_s9 = inlined_call_operand.hbm [shape: f32[128,128], index: 9, kind: input, shape index: {}]   ;;  %s704_s10 = inlined_call_operand.vmem [shape: f32[1,128], index: 10, kind: input, shape index: {}]   ;;  %s705_s11 = inlined_call_operand.hbm [shape: f32[8,128], index: 11, kind: output, shape index: {}]  }
   0x1   :  { %17 = vsyncpa [#allocation6], 0 }
   0x2   :  { %18 = vsyncpa [#allocation9], 0 }
   0x3   :  { %19 = vsyncpa [#allocation12], 0  ;;  %s36_s19 = sshll.u32 %s695_s1, 4  ;;  %s37_s19 = int_to_ptr.hbm [resolvable:$true] %s36_s19 }
   0x4   :  { %20 = vsyncpa [#allocation4], 0  ;;  %s574_s20 = smov [#allocation5]   ;;  %s66_s24 = sshll.u32 %s699_s5, 4  ;;  %s67_s24 = int_to_ptr.hbm [resolvable:$true] %s66_s24 }
   0x5   :  { %s38_s21 = sshll.u32 %s574_s20, 4  ;;  %s575_s25 = smov 128   ;;  %s39_s21 = int_to_ptr.vmem [resolvable:$true] %s38_s21 }
   0x6   :  { %s576_s26 = smov 8   ;;  %s577_s27 = smov [#allocation8]  }
   0x7   :  { %44 = dma.hbm_to_vmem [thread:$0]  %s37_s19, 256, %s39_s21, [#allocation6], %s575_s25, %s575_s25, %s576_s26  }
   0x8   :  { %s68_s28 = sshll.u32 %s577_s27, 4  ;;  %s26_s30 = sshll.u32 %s694_s0, 4  ;;  %s69_s28 = int_to_ptr.vmem [resolvable:$true] %s68_s28  ;;  %s27_s30 = int_to_ptr.hbm [resolvable:$true] %s26_s30 }
   0x9   :  { %74 = dma.hbm_to_vmem [thread:$0]  %s67_s24, 2048, %s69_s28, [#allocation9], %s575_s25, %s575_s25, %s576_s26  }
   0xa   :  { %s51_s13 = sshll.u32 %s697_s3, 4  ;;  %s578_s14 = smov [#allocation2]   ;;  %s52_s13 = int_to_ptr.hbm [resolvable:$true] %s51_s13 }
   0xb   :  { %s28_s15 = sshll.u32 %s578_s14, 4  ;;  %s579_s16 = smov [#allocation7]   ;;  %s29_s15 = int_to_ptr.vmem [resolvable:$true] %s28_s15 }
   0xc   :  { %31 = dma.hbm_to_vmem [thread:$0]  %s27_s30, 128, %s29_s15, [#allocation3]  }
   0xd   :  { %s53_s17 = sshll.u32 %s579_s16, 4  ;;  %s81_s0 = sshll.u32 %s701_s7, 4  ;;  %s54_s17 = int_to_ptr.vmem [resolvable:$true] %s53_s17  ;;  %s82_s0 = int_to_ptr.hbm [resolvable:$true] %s81_s0 }
   0xe   :  { %59 = dma.hbm_to_vmem [thread:$0]  %s52_s13, 2048, %s54_s17, [#allocation6], %s575_s25, %s575_s25, %s576_s26  }
   0xf   :  { %s96_s3 = sshll.u32 %s703_s9, 4  ;;  %s580_s22 = smov [#allocation10]   ;;  %s97_s3 = int_to_ptr.hbm [resolvable:$true] %s96_s3 }
  0x10   :  { %s83_s23 = sshll.u32 %s580_s22, 4  ;;  %s581_s24 = smov [#allocation11]   ;;  %s84_s23 = int_to_ptr.vmem [resolvable:$true] %s83_s23 }
  0x11   :  { %89 = dma.hbm_to_vmem [thread:$0]  %s82_s0, 2048, %s84_s23, [#allocation9], %s575_s25, %s575_s25, %s576_s26  }
  0x12   :  { %s98_s7 = sshll.u32 %s581_s24, 4  ;;  %s99_s7 = int_to_ptr.vmem [resolvable:$true] %s98_s7 }
  0x13   :  { %104 = dma.hbm_to_vmem [thread:$0]  %s97_s3, 2048, %s99_s7, [#allocation12], %s575_s25, %s575_s25, %s576_s26  }
  0x14   :  { %564 = dma.done.wait [#allocation3], 128  }
  0x15   :  { %565 = vsyncadd [#allocation3], 4294967168 }
  0x16   :  { %566 = dma.done.wait [#allocation6], 2304  }
  0x17   :  { %567 = vsyncadd [#allocation6], 4294964992 }
  0x18   :  { %568 = dma.done.wait [#allocation9], 4096  }
  0x19   :  { %569 = vsyncadd [#allocation9], 4294963200 }
  0x1a   :  { %570 = dma.done.wait [#allocation12], 2048  }
  0x1b   :  { %571 = vsyncadd [#allocation12], 4294965248  ;;  %v133_v0 = vld [vmem:[#allocation5 + $0x8] sm:$0xff]  ;;  %v132_v1 = vld [vmem:[#allocation5] sm:$0xff]  ;;  %vm138_vm0 = vcmask 130048   ;;  %s364_s12 = sshll.u32 %s705_s11, 4  ;;  %s365_s12 = int_to_ptr.hbm [resolvable:$true] %s364_s12 }
  0x1c   :  { %156 = vmatpush.msra.mxu0 %v133_v0  ;;  %v131_v2 = vld [vmem:[#allocation2] sm:$0xff]  ;;  %v180_v3 = vld [vmem:[#allocation7 + $0x78] sm:$0xff]  ;;  %v179_v4 = vld [vmem:[#allocation7 + $0x70] sm:$0xff] }
  0x1d   :  { %185 = vmatpush.msra.mxu1 %v180_v3  ;;  %v178_v5 = vld [vmem:[#allocation7 + $0x68] sm:$0xff]  ;;  %v177_v6 = vld [vmem:[#allocation7 + $0x60] sm:$0xff]  ;;  %v176_v7 = vld [vmem:[#allocation7 + $0x58] sm:$0xff] }
  0x1e   :  { %157 = vmatpush.msra.mxu0 %v132_v1  ;;  %v175_v8 = vld [vmem:[#allocation7 + $0x50] sm:$0xff]  ;;  %v174_v9 = vld [vmem:[#allocation7 + $0x48] sm:$0xff]  ;;  %v173_v10 = vld [vmem:[#allocation7 + $0x40] sm:$0xff] }
  0x1f   :  { %377 = vmatmul.msk.f32.vlgmr.msra.gmra.mxu0 %vm138_vm0, %v131_v2  ;;  %186 = vmatpush.msra.mxu1 %v179_v4  ;;  %v172_v11 = vld [vmem:[#allocation7 + $0x38] sm:$0xff]  ;;  %v171_v12 = vld [vmem:[#allocation7 + $0x30] sm:$0xff]  ;;  %v170_v13 = vld [vmem:[#allocation7 + $0x28] sm:$0xff] }
  0x20   :  { %v169_v14 = vld [vmem:[#allocation7 + $0x20] sm:$0xff]  ;;  %v168_v15 = vld [vmem:[#allocation7 + $0x18] sm:$0xff]  ;;  %v167_v16 = vld [vmem:[#allocation7 + $0x10] sm:$0xff] }
  0x21   :  { %187 = vmatpush.msra.mxu1 %v178_v5  ;;  %v166_v17 = vld [vmem:[#allocation7 + $0x8] sm:$0xff]  ;;  %v165_v18 = vld [vmem:[#allocation7] sm:$0xff]  ;;  %v223_v19 = vld [vmem:[#allocation8 + $0x78] sm:$0xff] }
  0x22   :  { %v222_v20 = vld [vmem:[#allocation8 + $0x70] sm:$0xff]  ;;  %228 = vmatpush.msra.mxu2 %v223_v19  ;;  %v221_v21 = vld [vmem:[#allocation8 + $0x68] sm:$0xff]  ;;  %v220_v22 = vld [vmem:[#allocation8 + $0x60] sm:$0xff] }
  0x23   :  { %188 = vmatpush.msra.mxu1 %v177_v6  ;;  %v219_v23 = vld [vmem:[#allocation8 + $0x58] sm:$0xff]  ;;  %v218_v24 = vld [vmem:[#allocation8 + $0x50] sm:$0xff]  ;;  %v217_v25 = vld [vmem:[#allocation8 + $0x48] sm:$0xff] }
  0x24   :  { %229 = vmatpush.msra.mxu2 %v222_v20  ;;  %v216_v26 = vld [vmem:[#allocation8 + $0x40] sm:$0xff]  ;;  %v215_v27 = vld [vmem:[#allocation8 + $0x38] sm:$0xff]  ;;  %v214_v28 = vld [vmem:[#allocation8 + $0x30] sm:$0xff] }
  0x25   :  { %189 = vmatpush.msra.mxu1 %v176_v7  ;;  %v213_v29 = vld [vmem:[#allocation8 + $0x28] sm:$0xff]  ;;  %v212_v30 = vld [vmem:[#allocation8 + $0x20] sm:$0xff]  ;;  %v211_v31 = vld [vmem:[#allocation8 + $0x18] sm:$0xff] }
  0x26   :  { %230 = vmatpush.msra.mxu2 %v221_v21  ;;  %v387_v32 = vld [vmem:[%s696_s2] ss:$0 sm:$0xff]  ;;  %v210_v37 = vld [vmem:[#allocation8 + $0x10] sm:$0xff]  ;;  %v208_v39 = vld [vmem:[#allocation8] sm:$0xff] }
  0x27   :  { %190 = vmatpush.msra.mxu1 %v175_v8  ;;  %v209_v38 = vld [vmem:[#allocation8 + $0x8] sm:$0xff]  ;;  %v266_v40 = vld [vmem:[#allocation10 + $0x78] sm:$0xff]  ;;  %v265_v41 = vld [vmem:[#allocation10 + $0x70] sm:$0xff] }
  0x28   :  { %231 = vmatpush.msra.mxu2 %v220_v22  ;;  %271 = vmatpush.msra.mxu3 %v266_v40  ;;  %v264_v42 = vld [vmem:[#allocation10 + $0x68] sm:$0xff]  ;;  %v263_v43 = vld [vmem:[#allocation10 + $0x60] sm:$0xff]  ;;  %v262_v44 = vld [vmem:[#allocation10 + $0x58] sm:$0xff] }
  0x29   :  { %191 = vmatpush.msra.mxu1 %v174_v9  ;;  %v261_v45 = vld [vmem:[#allocation10 + $0x50] sm:$0xff]  ;;  %v260_v46 = vld [vmem:[#allocation10 + $0x48] sm:$0xff]  ;;  %v259_v47 = vld [vmem:[#allocation10 + $0x40] sm:$0xff] }
  0x2a   :  { %232 = vmatpush.msra.mxu2 %v219_v23  ;;  %272 = vmatpush.msra.mxu3 %v265_v41  ;;  %v258_v48 = vld [vmem:[#allocation10 + $0x38] sm:$0xff]  ;;  %v257_v49 = vld [vmem:[#allocation10 + $0x30] sm:$0xff]  ;;  %v256_v50 = vld [vmem:[#allocation10 + $0x28] sm:$0xff] }
  0x2b   :  { %192 = vmatpush.msra.mxu1 %v173_v10  ;;  %v255_v51 = vld [vmem:[#allocation10 + $0x20] sm:$0xff]  ;;  %v254_v52 = vld [vmem:[#allocation10 + $0x18] sm:$0xff]  ;;  %v388_v53 = vld [vmem:[%s698_s4] ss:$0 sm:$0xff] }
  0x2c   :  { %233 = vmatpush.msra.mxu2 %v218_v24  ;;  %273 = vmatpush.msra.mxu3 %v264_v42  ;;  %v253_v58 = vld [vmem:[#allocation10 + $0x10] sm:$0xff]  ;;  %v252_v59 = vld [vmem:[#allocation10 + $0x8] sm:$0xff]  ;;  %v251_v60 = vld [vmem:[#allocation10] sm:$0xff] }
  0x2d   :  { %193 = vmatpush.msra.mxu1 %v172_v11  ;;  %v309_v61 = vld [vmem:[#allocation11 + $0x78] sm:$0xff]  ;;  %v308_v62 = vld [vmem:[#allocation11 + $0x70] sm:$0xff]  ;;  %v307_v63 = vld [vmem:[#allocation11 + $0x68] sm:$0xff] }
  0x2e   :  { %234 = vmatpush.msra.mxu2 %v217_v25  ;;  %274 = vmatpush.msra.mxu3 %v263_v43  ;;  %v306_v0 = vld [vmem:[#allocation11 + $0x60] sm:$0xff]  ;;  %v305_v1 = vld [vmem:[#allocation11 + $0x58] sm:$0xff]  ;;  %v304_v2 = vld [vmem:[#allocation11 + $0x50] sm:$0xff] }
  0x2f   :  { %194 = vmatpush.msra.mxu1 %v171_v12  ;;  %314 = vmatpush.msrb.mxu0 %v309_v61  ;;  %v303_v3 = vld [vmem:[#allocation11 + $0x48] sm:$0xff]  ;;  %v302_v4 = vld [vmem:[#allocation11 + $0x40] sm:$0xff]  ;;  %v301_v5 = vld [vmem:[#allocation11 + $0x38] sm:$0xff] }
  0x30   :  { %235 = vmatpush.msra.mxu2 %v216_v26  ;;  %275 = vmatpush.msra.mxu3 %v262_v44  ;;  %v300_v6 = vld [vmem:[#allocation11 + $0x30] sm:$0xff]  ;;  %v299_v7 = vld [vmem:[#allocation11 + $0x28] sm:$0xff]  ;;  %v298_v8 = vld [vmem:[#allocation11 + $0x20] sm:$0xff] }
  0x31   :  { %195 = vmatpush.msra.mxu1 %v170_v13  ;;  %315 = vmatpush.msrb.mxu0 %v308_v62  ;;  %v297_v9 = vld [vmem:[#allocation11 + $0x18] sm:$0xff]  ;;  %v389_v10 = vld [vmem:[%s700_s6] ss:$0 sm:$0xff] }
  0x32   :  { %236 = vmatpush.msra.mxu2 %v215_v27  ;;  %276 = vmatpush.msra.mxu3 %v261_v45  ;;  %v391_v23 = vld [vmem:[%s704_s10] ss:$0 sm:$0xff] }
  0x33   :  { %196 = vmatpush.msra.mxu1 %v169_v14  ;;  %316 = vmatpush.msrb.mxu0 %v307_v63 }
  0x34   :  { %237 = vmatpush.msra.mxu2 %v214_v28  ;;  %277 = vmatpush.msra.mxu3 %v260_v46 }
  0x35   :  { %197 = vmatpush.msra.mxu1 %v168_v15  ;;  %317 = vmatpush.msrb.mxu0 %v306_v0  ;;  %v296_v15 = vld [vmem:[#allocation11 + $0x10] sm:$0xff] }
  0x36   :  { %238 = vmatpush.msra.mxu2 %v213_v29  ;;  %278 = vmatpush.msra.mxu3 %v259_v47 }
  0x37   :  { %198 = vmatpush.msra.mxu1 %v167_v16  ;;  %318 = vmatpush.msrb.mxu0 %v305_v1  ;;  %v295_v16 = vld [vmem:[#allocation11 + $0x8] sm:$0xff] }
  0x38   :  { %239 = vmatpush.msra.mxu2 %v212_v30  ;;  %279 = vmatpush.msra.mxu3 %v258_v48 }
  0x39   :  { %199 = vmatpush.msra.mxu1 %v166_v17  ;;  %319 = vmatpush.msrb.mxu0 %v304_v2  ;;  %v294_v17 = vld [vmem:[#allocation11] sm:$0xff] }
  0x3a   :  { %240 = vmatpush.msra.mxu2 %v211_v31  ;;  %280 = vmatpush.msra.mxu3 %v257_v49 }
  0x3b   :  { %200 = vmatpush.msra.mxu1 %v165_v18  ;;  %320 = vmatpush.msrb.mxu0 %v303_v3  ;;  %v390_v18 = vld [vmem:[%s702_s8] ss:$0 sm:$0xff]  ;;  %s582_s8 = smov [#allocation13]  }
  0x3c   :  { %241 = vmatpush.msra.mxu2 %v210_v37  ;;  %281 = vmatpush.msra.mxu3 %v256_v50  ;;  %s362_s10 = sshll.u32 %s582_s8, 4  ;;  %s363_s10 = int_to_ptr.vmem [resolvable:$true] %s362_s10 }
  0x3d   :  { %321 = vmatpush.msrb.mxu0 %v302_v4 }
  0x3e   :  { %242 = vmatpush.msra.mxu2 %v209_v38  ;;  %282 = vmatpush.msra.mxu3 %v255_v51 }
  0x3f   :  { %322 = vmatpush.msrb.mxu0 %v301_v5 }
  0x40   :  { %243 = vmatpush.msra.mxu2 %v208_v39  ;;  %283 = vmatpush.msra.mxu3 %v254_v52 }
  0x41   :  { %323 = vmatpush.msrb.mxu0 %v300_v6 }
  0x42   :  { %284 = vmatpush.msra.mxu3 %v253_v58 }
  0x43   :  { %324 = vmatpush.msrb.mxu0 %v299_v7 }
  0x44   :  { %285 = vmatpush.msra.mxu3 %v252_v59 }
  0x45   :  { %325 = vmatpush.msrb.mxu0 %v298_v8 }
  0x46   :  { %286 = vmatpush.msra.mxu3 %v251_v60 }
  0x47   :  { %326 = vmatpush.msrb.mxu0 %v297_v9 }
  0x49   :  { %327 = vmatpush.msrb.mxu0 %v296_v15 }
  0x4b   :  { %328 = vmatpush.msrb.mxu0 %v295_v16 }
  0x4d   :  { %329 = vmatpush.msrb.mxu0 %v294_v17 }
  0x9c   :  { %v159_v33 = vpop.f32.mrf.mxu0 }
  0x9d   :  { %v160_v34 = vadd.f32 %v387_v32, %v159_v33 }
  0x9f   :  { %vm162_vm1 = vcmp.gt.f32.partialorder %v160_v34, 0.0  ;;  %v163_v35 = vmul.f32 0.2, %v160_v34 }
  0xa1   :  { %v164_v36 = vsel %vm162_vm1, %v160_v34, %v163_v35 }
  0xa2   :  { %201 = vmatmul.f32.vlgmr.msra.gmra.mxu1 %v164_v36 }
 0x11f   :  { %v202_v54 = vpop.f32.mrf.mxu1 }
 0x120   :  { %v203_v55 = vadd.f32 %v388_v53, %v202_v54 }
 0x122   :  { %vm205_vm2 = vcmp.gt.f32.partialorder %v203_v55, 0.0  ;;  %v206_v56 = vmul.f32 0.2, %v203_v55 }
 0x124   :  { %v207_v57 = vsel %vm205_vm2, %v203_v55, %v206_v56 }
 0x125   :  { %244 = vmatmul.f32.vlgmr.msra.gmra.mxu2 %v207_v57 }
 0x1a8   :  { %v245_v11 = vpop.f32.mrf.mxu2 }
 0x1a9   :  { %v246_v12 = vadd.f32 %v389_v10, %v245_v11 }
 0x1ab   :  { %vm248_vm3 = vcmp.gt.f32.partialorder %v246_v12, 0.0  ;;  %v249_v13 = vmul.f32 0.2, %v246_v12 }
 0x1ad   :  { %v250_v14 = vsel %vm248_vm3, %v246_v12, %v249_v13 }
 0x1ae   :  { %287 = vmatmul.f32.vlgmr.msra.gmra.mxu3 %v250_v14 }
 0x231   :  { %v288_v19 = vpop.f32.mrf.mxu3 }
 0x232   :  { %v289_v20 = vadd.f32 %v390_v18, %v288_v19 }
 0x234   :  { %v292_v21 = vmul.f32 0.2, %v289_v20  ;;  %vm291_vm4 = vcmp.gt.f32.partialorder %v289_v20, 0.0 }
 0x236   :  { %v293_v22 = vsel %vm291_vm4, %v289_v20, %v292_v21 }
 0x237   :  { %330 = vmatmul.f32.vlgmr.msrb.gmra.mxu0 %v293_v22 }
 0x2b4   :  { %v331_v24 = vpop.f32.mrf.mxu0 }
 0x2b5   :  { %v332_v25 = vadd.f32 %v391_v23, %v331_v24 }
 0x2b7   :  { %334 = vmax.xlane.f32.xlu0 %v332_v25 }
 0x32a   :  { %v335_v26 = vpop.xlane.xlu0 %334 }
 0x32b   :  { %v336_v27 = vsub.f32 %v332_v25, %v335_v26 }
 0x32d   :  { %v337_v28 = vmul.f32 1.442695, %v336_v27 }
 0x32f   :  { %392 = vpow2.f32 %v337_v28 }
 0x335   :  { %v393_v29 = vpop.eup %392 }
 0x336   :  { %339 = vadd.xlane.f32.xlu0 %v393_v29 }
 0x3a9   :  { %v340_v30 = vpop.xlane.xlu0 %339 }
 0x3aa   :  { %394 = vrcp.f32 %v340_v30  ;;  %v352_v34 = vand.u32 2147483648, %v340_v30  ;;  %v350_v36 = vand.u32 2147483647, %v340_v30  ;;  %vm346_vm6 = vweird.f32 %v340_v30 }
 0x3ac   :  { %v353_v38 = vor.u32 1.1754944e-38, %v352_v34  ;;  %vm351_vm8 = vcmp.eq.f32.partialorder %v350_v36, 8.507059e+37 }
 0x3b0   :  { %v395_v31 = vpop.eup %394 }
 0x3b1   :  { %v342_v32 = vmul.f32 %v395_v31, %v340_v30  ;;  %vm347_vm5 = vweird.f32 %v395_v31 }
 0x3b2   :  { %vm348_vm7 = vmor %vm346_vm6, %vm347_vm5 }
 0x3b3   :  { %v343_v33 = vsub.f32 1.0, %v342_v32 }
 0x3b5   :  { %v344_v35 = vmul.f32 %v395_v31, %v343_v33 }
 0x3b7   :  { %v345_v37 = vadd.f32 %v395_v31, %v344_v35 }
 0x3b9   :  { %v349_v39 = vsel %vm348_vm7, %v395_v31, %v345_v37 }
 0x3ba   :  { %v354_v40 = vsel %vm351_vm8, %v353_v38, %v349_v39 }
 0x3bb   :  { %v355_v41 = vmul.f32 %v393_v29, %v354_v40 }
 0x3bd   :  { %356 = vst [vmem:[#allocation13] sm:$0xff] %v355_v41 }
 0x3be   :  { %367 = dma.vmem_to_hbm [thread:$0]  %s363_s10, 128, %s365_s12, [#allocation4]  }
 0x3bf   :  { %572 = dma.done.wait [#allocation4], 128  }
 0x3c0   :  { %573 = vsyncadd [#allocation4], 4294967168 }
 0x3c1   :  { %372 = vsyncpa [#allocation3], 1 }
 0x3c2   :  { %373 = vsyncpa [#allocation6], 1 }
 0x3c3   :  { %374 = vsyncpa [#allocation9], 1 }
 0x3c4   :  { %375 = vsyncpa [#allocation12], 1 }
 0x3c5   :  { %376 = vsyncpa [#allocation4], 1 }

</bundles_post_ra>
